<compile_context>
chip_gen: v7x
topology: tpu7x:2x2x1
jax: 0.10.0
libtpu: 0.0.40
codegen_flags: <defaults>
</compile_context>

<pallas_src>
import functools

import jax
import jax.numpy as jnp
import numpy as np
from jax.experimental import pallas as pl
from jax.experimental.pallas import tpu as pltpu


def _layernorm(x, g, b, eps=1e-5):
    mu = jnp.mean(x, axis=-1, keepdims=True)
    xc = x - mu
    var = jnp.mean(xc * xc, axis=-1, keepdims=True)
    return xc * jax.lax.rsqrt(var + eps) * g + b


def _vmem_limit_bytes():
    # ~80% of physical VMEM: ~51 MiB on v7x (64 MiB), ~102 MiB on v5e/v6e (128 MiB).
    try:
        info = pltpu.get_tpu_info()
        cap = int(getattr(info, "vmem_capacity_bytes", 64 << 20))
    except Exception:
        cap = 64 << 20
    return min(int(cap * 0.8), 112 << 20)


# ----------------------------------------------------------------------------
# Kernel 1: patch embed + class token + positional embedding + ln_pre
# ----------------------------------------------------------------------------
def _embed_kernel(patches_ref, wconv_ref, cls_ref, pos_ref, g_ref, b_ref,
                  o_ref, *, seq_len, seq_pad):
    L, Lp = seq_len, seq_pad
    pe = jnp.dot(patches_ref[...], wconv_ref[...],
                 preferred_element_type=jnp.float32)                 # (G, C) f32
    tok = jnp.concatenate([cls_ref[...], pe], axis=0) + pos_ref[...]  # (L, C)
    tok = _layernorm(tok, g_ref[...], b_ref[...])
    if Lp > L:  # zero padding rows -> one dense aligned store
        tok = jnp.concatenate(
            [tok, jnp.zeros((Lp - L, tok.shape[1]), tok.dtype)], axis=0)
    o_ref[...] = tok


# ----------------------------------------------------------------------------
# Kernel 2: transformer stack + ln_post + output projection
# ----------------------------------------------------------------------------
def _vit_kernel(tokens_ref,
                ln1g_ref, ln1b_ref, wqkv_ref, bqkv_ref, wo_ref, bo_ref,
                ln2g_ref, ln2b_ref, wfc_ref, bfc_ref, wpr_ref, bpr_ref,
                gpost_ref, bpost_ref, proj_ref,
                o_ref,
                state, attn_buf,
                *, chunk, seq_len, seq_pad, width, num_heads):
    layer = pl.program_id(1)
    NB, L, Lp, C, H = chunk, seq_len, seq_pad, width, num_heads
    hd = C // H
    bf16 = jnp.bfloat16

    def linear(x, w_ref, b_ref):
        # bf16 MXU operands, f32 accumulation, f32 bias.
        y = jnp.dot(x.astype(bf16), w_ref[0],
                    preferred_element_type=jnp.float32)
        return y + b_ref[0]

    # ---- chunk start: load the embedded tokens into the residual scratch ----
    @pl.when(layer == 0)
    def _():
        state[...] = tokens_ref[...]

    # ---- residual attention block ----
    x = state[...]                                                   # (NB*Lp, C) f32
    h1 = _layernorm(x, ln1g_ref[0], ln1b_ref[0])
    qkv = linear(h1, wqkv_ref, bqkv_ref)                             # (NB*Lp, 3C) f32

    # Head-batched attention; one lane-dense full-width store per batch element.
    # TODO(synk): for large chunk sizes turn this Python loop into a fori_loop
    # over pl.ds row blocks (or keep chunk == 1 and rely on the grid axis).
    for b in range(NB):
        r0 = b * Lp

        def heads(z):  # (L, C) f32 -> (H, L, hd) bf16
            return jnp.transpose(z.reshape(L, H, hd), (1, 0, 2)).astype(bf16)

        qkv_b = qkv[r0:r0 + L, :]
        q = heads(qkv_b[:, 0:C])            # 1/sqrt(hd) folded into w_qkv/b_qkv
        k = heads(qkv_b[:, C:2 * C])
        v = heads(qkv_b[:, 2 * C:3 * C])
        s = jnp.einsum("hqd,hkd->hqk", q, k,
                       preferred_element_type=jnp.float32)           # (H, L, L) f32
        s = s - jnp.max(s, axis=-1, keepdims=True)
        p = jnp.exp(s)
        p = p * pl.reciprocal(jnp.sum(p, axis=-1, keepdims=True), approx=True)
        o = jnp.einsum("hqk,hkd->hqd", p.astype(bf16), v,
                       preferred_element_type=jnp.float32)           # (H, L, hd) f32
        o = jnp.transpose(o, (1, 0, 2)).reshape(L, C)                # (L, C)
        if Lp > L:  # pad to Lp rows -> fully dense, unmasked store
            o = jnp.concatenate(
                [o, jnp.zeros((Lp - L, C), jnp.float32)], axis=0)
        attn_buf[r0:r0 + Lp, :] = o.astype(bf16)

    x = x + jnp.dot(attn_buf[...], wo_ref[0],
                    preferred_element_type=jnp.float32) + bo_ref[0]

    # ---- MLP block ----
    h2 = _layernorm(x, ln2g_ref[0], ln2b_ref[0])
    f = linear(h2, wfc_ref, bfc_ref)                                 # (NB*Lp, 4C) f32
    f = f * pl.reciprocal(1.0 + jnp.exp(-1.702 * f), approx=True)    # QuickGELU
    x = x + linear(f, wpr_ref, bpr_ref)
    state[...] = x

    # ---- last layer: ln_post on the class tokens + output projection ----
    @pl.when(layer == pl.num_programs(1) - 1)
    def _():
        if NB == 1:
            cls_rows = state[0:1, :]
        else:
            cls_rows = state[pl.ds(0, NB, stride=Lp), :]             # strided gather
        cls_rows = _layernorm(cls_rows, gpost_ref[...], bpost_ref[...])
        res = jnp.dot(cls_rows.astype(bf16), proj_ref[...],
                      preferred_element_type=jnp.float32)            # (NB, Dout)
        o_ref[...] = res[None].astype(o_ref.dtype)


# ----------------------------------------------------------------------------
# Wrapper
# ----------------------------------------------------------------------------
def vision_transformer(x_nchw, params, *, patch_size, num_heads, batch_chunk=1):
    N, Cin, Himg, Wimg = x_nchw.shape
    P = patch_size
    assert Himg % P == 0 and Wimg % P == 0
    Hg, Wg = Himg // P, Wimg // P
    G = Hg * Wg
    C = params["w_conv"].shape[0]
    assert C % num_heads == 0
    K = Cin * P * P
    L = G + 1
    Lp = ((L + 7) // 8) * 8
    layers = params["w_qkv"].shape[0]
    Dout = params["proj"].shape[1]
    assert N % batch_chunk == 0
    NC = N // batch_chunk
    R = batch_chunk * Lp
    bf16, f32 = jnp.bfloat16, jnp.float32

    # ---- host-side layout / dtype prep (one-time weight packing) ----
    # NCHW -> non-overlapping patches, (cin, p, q) minor order matches
    # conv_weight.reshape(C, Cin*P*P).
    patches = jnp.transpose(
        x_nchw.reshape(N, Cin, Hg, P, Wg, P), (0, 2, 4, 1, 3, 5)
    ).reshape(N * G, K).astype(bf16)
    w_conv_t = jnp.transpose(params["w_conv"].reshape(C, K)).astype(bf16)   # (K, C)

    hd = C // num_heads
    scale = float(hd) ** -0.5
    qs = jnp.concatenate([jnp.full((C,), scale, f32), jnp.ones((2 * C,), f32)])
    w_qkv_t = jnp.transpose(params["w_qkv"] * qs[None, :, None],
                            (0, 2, 1)).astype(bf16)                 # (layers, C, 3C)
    b_qkv_s = (params["b_qkv"] * qs[None, None, :]).astype(f32)     # (layers, 1, 3C)
    w_o_t = jnp.transpose(params["w_o"], (0, 2, 1)).astype(bf16)    # (layers, C, C)
    w_fc_t = jnp.transpose(params["w_fc"], (0, 2, 1)).astype(bf16)  # (layers, C, 4C)
    w_pr_t = jnp.transpose(params["w_pr"], (0, 2, 1)).astype(bf16)  # (layers, 4C, C)
    proj_bf = params["proj"].astype(bf16)                           # (C, Dout)

    vmem_limit = _vmem_limit_bytes()

    # ---- kernel 1: embed ----
    tokens = pl.pallas_call(
        functools.partial(_embed_kernel, seq_len=L, seq_pad=Lp),
        out_shape=jax.ShapeDtypeStruct((N * Lp, C), f32),
        grid_spec=pltpu.PrefetchScalarGridSpec(
            num_scalar_prefetch=0,
            grid=(N,),
            in_specs=[
                pl.BlockSpec((G, K), lambda b: (b, 0)),
                pl.BlockSpec((K, C), lambda b: (0, 0)),
                pl.BlockSpec((1, C), lambda b: (0, 0)),
                pl.BlockSpec((L, C), lambda b: (0, 0)),
                pl.BlockSpec((1, C), lambda b: (0, 0)),
                pl.BlockSpec((1, C), lambda b: (0, 0)),
            ],
            out_specs=pl.BlockSpec((Lp, C), lambda b: (b, 0)),
        ),
        compiler_params=pltpu.CompilerParams(
            dimension_semantics=("parallel",),
            vmem_limit_bytes=vmem_limit),
    )(patches, w_conv_t, params["cls"].astype(f32), params["pos"].astype(f32),
      params["g_pre"].astype(f32), params["b_pre"].astype(f32))

    # ---- kernel 2: transformer + head ----
    kernel = functools.partial(
        _vit_kernel, chunk=batch_chunk, seq_len=L, seq_pad=Lp,
        width=C, num_heads=num_heads)

    def per_layer(shape):
        return pl.BlockSpec((1,) + shape,
                            lambda bc, l, _s=shape: (l,) + (0,) * len(_s))

    def const(shape):
        return pl.BlockSpec(shape, lambda bc, l, _s=shape: (0,) * len(_s))

    out = pl.pallas_call(
        kernel,
        out_shape=jax.ShapeDtypeStruct((NC, batch_chunk, Dout), f32),
        grid_spec=pltpu.PrefetchScalarGridSpec(
            num_scalar_prefetch=0,
            grid=(NC, layers),
            in_specs=[
                pl.BlockSpec((R, C), lambda bc, l: (bc, 0)),         # tokens
                per_layer((1, C)), per_layer((1, C)),                # ln_1 g, b
                per_layer((C, 3 * C)), per_layer((1, 3 * C)),        # fused qkv
                per_layer((C, C)), per_layer((1, C)),                # attn out proj
                per_layer((1, C)), per_layer((1, C)),                # ln_2 g, b
                per_layer((C, 4 * C)), per_layer((1, 4 * C)),        # mlp c_fc
                per_layer((4 * C, C)), per_layer((1, C)),            # mlp c_proj
                const((1, C)), const((1, C)),                        # ln_post g, b
                const((C, Dout)),                                    # final proj
            ],
            out_specs=pl.BlockSpec((1, batch_chunk, Dout),
                                   lambda bc, l: (bc, 0, 0)),
            scratch_shapes=[
                pltpu.VMEM((R, C), f32),      # residual stream (per chunk)
                pltpu.VMEM((R, C), bf16),     # attention output slab
            ],
        ),
        compiler_params=pltpu.CompilerParams(
            dimension_semantics=("parallel", "arbitrary"),
            vmem_limit_bytes=vmem_limit),
    )(tokens,
      params["ln1_g"].astype(f32), params["ln1_b"].astype(f32),
      w_qkv_t, b_qkv_s, w_o_t, params["b_o"].astype(f32),
      params["ln2_g"].astype(f32), params["ln2_b"].astype(f32),
      w_fc_t, params["b_fc"].astype(f32), w_pr_t, params["b_pr"].astype(f32),
      params["g_post"].astype(f32), params["b_post"].astype(f32), proj_bf)

    return out.reshape(N, Dout)


# ----------------------------------------------------------------------------
# Pure-JAX f32 reference mirroring the PyTorch module
# ----------------------------------------------------------------------------
def _ln_ref(x, g, b, eps=1e-5):
    mu = x.mean(-1, keepdims=True)
    xc = x - mu
    var = (xc * xc).mean(-1, keepdims=True)
    return xc * jax.lax.rsqrt(var + eps) * g + b


def vision_transformer_ref(x_nchw, params, *, patch_size, num_heads):
    N, Cin, Himg, Wimg = x_nchw.shape
    P = patch_size
    Hg, Wg = Himg // P, Wimg // P
    G = Hg * Wg
    C = params["w_conv"].shape[0]
    K = Cin * P * P
    L = G + 1
    layers = params["w_qkv"].shape[0]
    hd = C // num_heads
    scale = float(hd) ** -0.5

    patches = jnp.transpose(
        x_nchw.reshape(N, Cin, Hg, P, Wg, P), (0, 2, 4, 1, 3, 5)
    ).reshape(N, G, K)
    pe = patches @ params["w_conv"].reshape(C, K).T
    cls = jnp.broadcast_to(params["cls"].reshape(1, 1, C), (N, 1, C))
    tok = jnp.concatenate([cls, pe], axis=1) + params["pos"][None]
    tok = _ln_ref(tok, params["g_pre"], params["b_pre"])
    for l in range(layers):
        h = _ln_ref(tok, params["ln1_g"][l], params["ln1_b"][l])
        qkv = h @ params["w_qkv"][l].T + params["b_qkv"][l]
        q = qkv[..., :C] * scale
        k = qkv[..., C:2 * C]
        v = qkv[..., 2 * C:]
        qh = q.reshape(N, L, num_heads, hd)
        kh = k.reshape(N, L, num_heads, hd)
        vh = v.reshape(N, L, num_heads, hd)
        s = jnp.einsum("nqhd,nkhd->nhqk", qh, kh)
        a = jax.nn.softmax(s, axis=-1)
        o = jnp.einsum("nhqk,nkhd->nqhd", a, vh).reshape(N, L, C)
        tok = tok + o @ params["w_o"][l].T + params["b_o"][l]
        h2 = _ln_ref(tok, params["ln2_g"][l], params["ln2_b"][l])
        f = h2 @ params["w_fc"][l].T + params["b_fc"][l]
        f = f * jax.nn.sigmoid(1.702 * f)
        tok = tok + f @ params["w_pr"][l].T + params["b_pr"][l]
    cls_out = _ln_ref(tok[:, 0, :], params["g_post"], params["b_post"])
    return cls_out @ params["proj"]


# ----------------------------------------------------------------------------
# Parameter construction
# ----------------------------------------------------------------------------
def make_params(key, *, in_channels, patch_size, width, layers, output_dim,
                input_resolution):
    C = width
    G = (input_resolution // patch_size) ** 2
    L = G + 1
    K = in_channels * patch_size * patch_size
    ks = iter(jax.random.split(key, 32))
    nrm = lambda shape, s: jax.random.normal(next(ks), shape, jnp.float32) * s
    return {
        "w_conv": nrm((C, in_channels, patch_size, patch_size), K ** -0.5),
        "cls": nrm((1, C), C ** -0.5),
        "pos": nrm((L, C), C ** -0.5),
        "g_pre": 1.0 + nrm((1, C), 0.05),
        "b_pre": nrm((1, C), 0.05),
        "ln1_g": 1.0 + nrm((layers, 1, C), 0.05),
        "ln1_b": nrm((layers, 1, C), 0.05),
        "w_qkv": nrm((layers, 3 * C, C), C ** -0.5),
        "b_qkv": nrm((layers, 1, 3 * C), 0.02),
        "w_o": nrm((layers, C, C), C ** -0.5),
        "b_o": nrm((layers, 1, C), 0.02),
        "ln2_g": 1.0 + nrm((layers, 1, C), 0.05),
        "ln2_b": nrm((layers, 1, C), 0.05),
        "w_fc": nrm((layers, 4 * C, C), C ** -0.5),
        "b_fc": nrm((layers, 1, 4 * C), 0.02),
        "w_pr": nrm((layers, C, 4 * C), (4 * C) ** -0.5),
        "b_pr": nrm((layers, 1, C), 0.02),
        "g_post": 1.0 + nrm((1, C), 0.05),
        "b_post": nrm((1, C), 0.05),
        "proj": nrm((C, output_dim), C ** -0.5),
    }


if __name__ == "__main__":
    # Small, module-consistent shapes:
    # batch=2, in_channels=4, input_resolution=16, patch=4 -> 16 patches (+cls),
    # width=32, layers=2, heads=4, output_dim=16.
    batch, in_channels, input_resolution, patch_size = 2, 4, 16, 4
    width, layers, heads, output_dim = 32, 2, 4, 16

    key = jax.random.PRNGKey(0)
    k_x, k_p = jax.random.split(key)
    x = jax.random.normal(
        k_x, (batch, in_channels, input_resolution, input_resolution),
        jnp.float32)
    params = make_params(
        k_p, in_channels=in_channels, patch_size=patch_size, width=width,
        layers=layers, output_dim=output_dim,
        input_resolution=input_resolution)

    out = vision_transformer(x, params, patch_size=patch_size, num_heads=heads,
                             batch_chunk=1)
    out = jax.block_until_ready(out)

    ref = jax.block_until_ready(
        vision_transformer_ref(x, params, patch_size=patch_size,
                               num_heads=heads))
    # Tolerance accounts for bf16 MXU operands + approx EUP reciprocals vs the
    # pure-f32 reference.
    np.testing.assert_allclose(np.asarray(out), np.asarray(ref),
                               rtol=5e-2, atol=5e-2)
    print("KERNEL_OK")
</pallas_src>

<mosaic_0001>
module attributes {stable_mosaic.version = 11 : i64} {
  func.func @_embed_kernel(%arg0: i32, %arg1: memref<16x64xbf16, #tpu.memory_space<vmem>>, %arg2: memref<64x32xbf16, #tpu.memory_space<vmem>>, %arg3: memref<1x32xf32, #tpu.memory_space<vmem>>, %arg4: memref<17x32xf32, #tpu.memory_space<vmem>>, %arg5: memref<1x32xf32, #tpu.memory_space<vmem>>, %arg6: memref<1x32xf32, #tpu.memory_space<vmem>>, %arg7: memref<24x32xf32, #tpu.memory_space<vmem>>) attributes {dimension_semantics = [#tpu.dimension_semantics<parallel>], iteration_bounds = array<i64: 2>, scalar_prefetch = 0 : i64, scratch_operands = 0 : i64, tpu.core_type = #tpu.core_type<tc>, window_params = [{transform_indices = @transform_0, window_bounds = array<i64: 16, 64>}, {pipeline_mode = #tpu.pipeline_mode<synchronous>, transform_indices = @transform_1, window_bounds = array<i64: 64, 32>}, {pipeline_mode = #tpu.pipeline_mode<synchronous>, transform_indices = @transform_2, window_bounds = array<i64: 1, 32>}, {pipeline_mode = #tpu.pipeline_mode<synchronous>, transform_indices = @transform_3, window_bounds = array<i64: 17, 32>}, {pipeline_mode = #tpu.pipeline_mode<synchronous>, transform_indices = @transform_4, window_bounds = array<i64: 1, 32>}, {pipeline_mode = #tpu.pipeline_mode<synchronous>, transform_indices = @transform_5, window_bounds = array<i64: 1, 32>}, {transform_indices = @transform_6, window_bounds = array<i64: 24, 32>}]} {
    %c0 = arith.constant 0 : index
    %c0_0 = arith.constant 0 : index
    %0 = vector.load %arg1[%c0, %c0_0] : memref<16x64xbf16, #tpu.memory_space<vmem>>, vector<16x64xbf16>
    %c0_1 = arith.constant 0 : index
    %c0_2 = arith.constant 0 : index
    %1 = vector.load %arg2[%c0_1, %c0_2] : memref<64x32xbf16, #tpu.memory_space<vmem>>, vector<64x32xbf16>
    %cst = arith.constant dense<0.000000e+00> : vector<16x32xf32>
    %2 = tpu.matmul %0, %1, %cst {dimension_numbers = #tpu.dot_dimension_numbers<[1], [0], [0], [1], [0, 0, 1, 1], [], []>} : vector<16x64xbf16>, vector<64x32xbf16>, vector<16x32xf32> -> vector<16x32xf32>
    %c0_3 = arith.constant 0 : index
    %c0_4 = arith.constant 0 : index
    %3 = vector.load %arg3[%c0_3, %c0_4] : memref<1x32xf32, #tpu.memory_space<vmem>>, vector<1x32xf32>
    %4 = tpu.concatenate %3, %2 in 0 : vector<1x32xf32>, vector<16x32xf32> -> vector<17x32xf32>
    %c0_5 = arith.constant 0 : index
    %c0_6 = arith.constant 0 : index
    %5 = vector.load %arg4[%c0_5, %c0_6] : memref<17x32xf32, #tpu.memory_space<vmem>>, vector<17x32xf32>
    %6 = arith.addf %4, %5 : vector<17x32xf32>
    %c0_7 = arith.constant 0 : index
    %c0_8 = arith.constant 0 : index
    %7 = vector.load %arg5[%c0_7, %c0_8] : memref<1x32xf32, #tpu.memory_space<vmem>>, vector<1x32xf32>
    %c0_9 = arith.constant 0 : index
    %c0_10 = arith.constant 0 : index
    %8 = vector.load %arg6[%c0_9, %c0_10] : memref<1x32xf32, #tpu.memory_space<vmem>>, vector<1x32xf32>
    %cst_11 = arith.constant dense<0.000000e+00> : vector<17xf32>
    %9 = vector.multi_reduction <add>, %6, %cst_11 [1] : vector<17x32xf32> to vector<17xf32>
    %10 = vector.shape_cast %9 : vector<17xf32> to vector<17x1xf32>
    %cst_12 = arith.constant 3.200000e+01 : f32
    %11 = vector.broadcast %cst_12 : f32 to vector<17x1xf32>
    %12 = arith.divf %10, %11 : vector<17x1xf32>
    %13 = vector.broadcast %12 : vector<17x1xf32> to vector<17x32xf32>
    %14 = arith.subf %6, %13 : vector<17x32xf32>
    %15 = arith.mulf %14, %14 : vector<17x32xf32>
    %cst_13 = arith.constant dense<0.000000e+00> : vector<17xf32>
    %16 = vector.multi_reduction <add>, %15, %cst_13 [1] : vector<17x32xf32> to vector<17xf32>
    %17 = vector.shape_cast %16 : vector<17xf32> to vector<17x1xf32>
    %cst_14 = arith.constant 3.200000e+01 : f32
    %18 = vector.broadcast %cst_14 : f32 to vector<17x1xf32>
    %19 = arith.divf %17, %18 : vector<17x1xf32>
    %cst_15 = arith.constant 9.99999974E-6 : f32
    %20 = vector.broadcast %cst_15 : f32 to vector<17x1xf32>
    %21 = arith.addf %19, %20 : vector<17x1xf32>
    %22 = math.rsqrt %21 : vector<17x1xf32>
    %23 = vector.broadcast %22 : vector<17x1xf32> to vector<17x32xf32>
    %24 = arith.mulf %14, %23 : vector<17x32xf32>
    %25 = vector.broadcast %7 : vector<1x32xf32> to vector<17x32xf32>
    %26 = arith.mulf %24, %25 : vector<17x32xf32>
    %27 = vector.broadcast %8 : vector<1x32xf32> to vector<17x32xf32>
    %28 = arith.addf %26, %27 : vector<17x32xf32>
    %cst_16 = arith.constant 0.000000e+00 : f32
    %29 = vector.broadcast %cst_16 : f32 to vector<7x32xf32>
    %30 = tpu.concatenate %28, %29 in 0 : vector<17x32xf32>, vector<7x32xf32> -> vector<24x32xf32>
    %c0_17 = arith.constant 0 : index
    %c0_18 = arith.constant 0 : index
    %31 = vector.load %arg7[%c0_17, %c0_18] : memref<24x32xf32, #tpu.memory_space<vmem>>, vector<24x32xf32>
    tpu.vector_store %arg7[%c0_17, %c0_18], %30 {strides = array<i32>} : memref<24x32xf32, #tpu.memory_space<vmem>>, vector<24x32xf32>,
    return
  }
  func.func @transform_0(%arg0: i32) -> (i32, i32) {
    %c0_i32 = arith.constant 0 : i32
    %c0_i32_0 = arith.constant 0 : i32
    return %arg0, %c0_i32 : i32, i32
  }
  func.func @transform_1(%arg0: i32) -> (i32, i32) {
    %c0_i32 = arith.constant 0 : i32
    %c0_i32_0 = arith.constant 0 : i32
    %c0_i32_1 = arith.constant 0 : i32
    return %c0_i32, %c0_i32_0 : i32, i32
  }
  func.func @transform_2(%arg0: i32) -> (i32, i32) {
    %c0_i32 = arith.constant 0 : i32
    %c0_i32_0 = arith.constant 0 : i32
    %c0_i32_1 = arith.constant 0 : i32
    return %c0_i32, %c0_i32_0 : i32, i32
  }
  func.func @transform_3(%arg0: i32) -> (i32, i32) {
    %c0_i32 = arith.constant 0 : i32
    %c0_i32_0 = arith.constant 0 : i32
    %c0_i32_1 = arith.constant 0 : i32
    return %c0_i32, %c0_i32_0 : i32, i32
  }
  func.func @transform_4(%arg0: i32) -> (i32, i32) {
    %c0_i32 = arith.constant 0 : i32
    %c0_i32_0 = arith.constant 0 : i32
    %c0_i32_1 = arith.constant 0 : i32
    return %c0_i32, %c0_i32_0 : i32, i32
  }
  func.func @transform_5(%arg0: i32) -> (i32, i32) {
    %c0_i32 = arith.constant 0 : i32
    %c0_i32_0 = arith.constant 0 : i32
    %c0_i32_1 = arith.constant 0 : i32
    return %c0_i32, %c0_i32_0 : i32, i32
  }
  func.func @transform_6(%arg0: i32) -> (i32, i32) {
    %c0_i32 = arith.constant 0 : i32
    %c0_i32_0 = arith.constant 0 : i32
    return %arg0, %c0_i32 : i32, i32
  }
}

</mosaic_0001>

<bundles_post_ra>
// kernel: tpu_custom_call.1
= control target key start
LH: loop header
LB: loop body
LE: loop exit
PB: predicated region body
PF: predicated region fallthrough
CT: control target
= control target key end

     0   :  { %s580_s21 = smov 0   ;;  %s643_s0 = inlined_call_operand.vmem [shape: bf16[32,64], index: 0, kind: input, shape index: {}]   ;;  %s644_s1 = inlined_call_operand.vmem [shape: bf16[64,32], index: 1, kind: input, shape index: {}]   ;;  %s645_s2 = inlined_call_operand.vmem [shape: f32[1,32], index: 2, kind: input, shape index: {}]   ;;  %s646_s3 = inlined_call_operand.vmem [shape: f32[17,32], index: 3, kind: input, shape index: {}]   ;;  %s647_s4 = inlined_call_operand.vmem [shape: f32[1,32], index: 4, kind: input, shape index: {}]   ;;  %s648_s5 = inlined_call_operand.vmem [shape: f32[1,32], index: 5, kind: input, shape index: {}]   ;;  %s649_s6 = inlined_call_operand.vmem [shape: f32[48,32], index: 6, kind: output, shape index: {}]  }
   0x1 LB: > { %s479_s22 = sadd.s32 4294967295, %s541_s21   ;;  %p483_p0 = scmp.ge.s32.totalorder %s541_s21, 1  ;;  %s541_s21 = sphi %s580_s21, %s16_s21  }
   0x2   : > { %p213_p1 = scmp.lt.s32.totalorder %s541_s21, 3 }
   0x4   : > { %p214_p2 = pnand %p483_p0, %p213_p1 }
   0x5   : > { %v524_v0 = vld [vmem:[%s644_s1] sm:$0xff] (!%p214_p2)   ;;  %v543_v1 = vmov (!%p214_p2), 0.0   ;;  %v525_v2 = vld [vmem:[%s644_s1 + $0x8] sm:$0xff] (!%p214_p2)   ;;  %vm544_vm0 = vmmov (!%p214_p2), 0   ;;  %s484_s27 = sshll.u32 (!%p214_p2), %s479_s22, 1  ;;  %v526_v3 = vld [vmem:[%s644_s1 + $0x10] sm:$0xff] (!%p214_p2)  }
   0x6   : > { %217 = sbr.rel (%p214_p2) target bundleno = 559 (0x22f), region = 44  ;;  %502 = vmatprep.subr.bf16.mxu0 (!%p214_p2), %v543_v1  ;;  %510 = vmatprep.mubr.msk.bf16.mxu0 (!%p214_p2), %vm544_vm0, %v543_v1  ;;  %p244_p3 = scmp.lt.s32.totalorder (!%p214_p2), %s484_s27, 3  ;;  %v527_v4 = vld [vmem:[%s644_s1 + $0x18] sm:$0xff] (!%p214_p2)   ;;  %vm295_vm1 = vcmask (!%p214_p2), 523264   ;;  %vm343_vm2 = vcmask (!%p214_p2), 1040384   ;;  %v352_v14 = vld [vmem:[%s646_s3 + $0x8] sm:$0xff] (!%p214_p2) }
   0x7   : > { %503 = vmatpush3.bf16.msra.mxu0 (!%p214_p2), %v524_v0  ;;  %v340_v9 = vld [vmem:[%s645_s2] sm:$0x1] (!%p214_p2)  ;;  %v353_v11 = vld [vmem:[%s646_s3 + $0x10] sm:$0x1] (!%p214_p2)  ;;  %vm366_vm3 = vcmask (!%p214_p2), 253952   ;;  %vm359_vm4 = vcmask (!%p214_p2), 261120  }
   0x8   : > { %504 = vmatprep.subr.bf16.mxu0 (!%p214_p2), %v543_v1  ;;  %v351_v16 = vld [vmem:[%s646_s3] sm:$0xff] (!%p214_p2)  ;;  %s249_s20 = smul.u32 (!%p214_p2), 3, %s479_s22 }
   0x9   : > { %v493_v49 = vld [vmem:[%s647_s4] ss:$0 sm:$0xff] (!%p214_p2) }
   0xa   : > { %p250_p4 = scmp.lt.s32.totalorder (!%p214_p2), %s249_s20, 5  ;;  %v494_v51 = vld [vmem:[%s648_s5] ss:$0 sm:$0xff] (!%p214_p2) }
   0xb   : > { %505 = vmatpush3.bf16.msra.mxu0 (!%p214_p2), %v525_v2 }
   0xc   : > { %506 = vmatprep.subr.bf16.mxu0 (!%p214_p2), %v543_v1 }
   0xd   : > { %s651_s27 = smov (!%p244_p3, %s484_s27), 3  ;;  %s653_s20 = smov (!%p250_p4, %s249_s20), 5 }
   0xe   : > { %s485_s30 = sshll.u32 %s651_s27, 2  ;;  %s486_s25 = sshll.u32 %s653_s20, 3 }
   0xf   : > { %s247_s9 = scalar_lea.vmem %s643_s0, %s485_s30  ;;  %507 = vmatpush3.bf16.msra.mxu0 %v526_v3  ;;  %s253_s29 = scalar_lea.vmem %s649_s6, %s486_s25 }
  0x10   : > { %508 = vmatprep.subr.bf16.mxu0 %v543_v1  ;;  %v528_v5 = vld [vmem:[%s247_s9] sm:$0xff]  }
  0x13   : > { %509 = vmatpush3.bf16.msra.mxu0 %v527_v4 }
  0x16   : > { %511 = vmatmul.mubr.msk.bf16.vlgmr.msra.gmra.mrb[0].mxu0 %vm295_vm1, %v528_v5 }
  0xe9   : > { %v333_v6 = vpop.f32.mrb[0].mxu0 }
  0xea   : > { %v344_v7 = vrot.slane %v333_v6, 7  ;;  %v512_v8 = vpop.f32.mrb[1].mxu0 }
  0xeb   : > { %v336_v10 = vpop.f32.mrb[2].mxu0 }
  0xec   : > { %v345_v12 = vrot.slane %v336_v10, 7  ;;  %v513_v13 = vpop.f32.mrb[3].mxu0  ;;  %v350_v15 = vsel %vm343_vm2, %v340_v9, %v344_v7 }
  0xed   : > { %v354_v21 = vadd.f32 %v351_v16, %v350_v15 }
  0xee   : > { %v356_v17 = vadd.f32 %v353_v11, %v345_v12  ;;  %v346_v18 = vsel %vm343_vm2, %v344_v7, %v345_v12 }
  0xef   : > { %v355_v19 = vadd.f32 %v352_v14, %v346_v18  ;;  %v360_v23 = vsel %vm359_vm4, %v354_v21, 0.0 }
  0xf0   : > { %v367_v20 = vsel %vm366_vm3, %v356_v17, 0.0 }
  0xf1   : > { %368 = vadd.xlane.f32.xlu0 %v367_v20  ;;  %v363_v22 = vsel %vm359_vm4, %v355_v19, 0.0 }
  0xf2   : > { %364 = vadd.xlane.f32.xlu1 %v363_v22 }
  0xf5   : > { %361 = vadd.xlane.f32.xlu0 %v360_v23 }
 0x17e   : > { %v369_v24 = vpop.xlane.xlu0 %368 }
 0x17f   : > { %v373_v25 = vmul.f32 0.03125, %v369_v24  ;;  %v365_v26 = vpop.xlane.xlu1 %364 }
 0x180   : > { %v372_v27 = vmul.f32 0.03125, %v365_v26 }
 0x181   : > { %v376_v28 = vsub.f32 %v356_v17, %v373_v25 }
 0x182   : > { %v375_v29 = vsub.f32 %v355_v19, %v372_v27  ;;  %v362_v30 = vpop.xlane.xlu0 %361 }
 0x183   : > { %v371_v31 = vmul.f32 0.03125, %v362_v30  ;;  %v379_v32 = vmul.f32 %v376_v28, %v376_v28 }
 0x184   : > { %v378_v35 = vmul.f32 %v375_v29, %v375_v29 }
 0x185   : > { %v374_v33 = vsub.f32 %v354_v21, %v371_v31  ;;  %v386_v34 = vsel %vm366_vm3, %v379_v32, 0.0 }
 0x186   : > { %387 = vadd.xlane.f32.xlu1 %v386_v34  ;;  %v383_v38 = vsel %vm359_vm4, %v378_v35, 0.0 }
 0x187   : > { %v377_v36 = vmul.f32 %v374_v33, %v374_v33 }
 0x189   : > { %v380_v37 = vsel %vm359_vm4, %v377_v36, 0.0 }
 0x18a   : > { %381 = vadd.xlane.f32.xlu0 %v380_v37  ;;  %384 = vadd.xlane.f32.xlu1 %v383_v38 }
 0x213   : > { %v388_v39 = vpop.xlane.xlu1 %387 }
 0x214   : > { %v391_v40 = vmul.f32 0.03125, %v388_v39 }
 0x216   : > { %v394_v41 = vadd.f32 1e-05, %v391_v40 }
 0x217   : > { %v382_v42 = vpop.xlane.xlu0 %381  ;;  %v385_v43 = vpop.xlane.xlu1 %384 }
 0x218   : > { %529 = vrsqrt.f32 %v394_v41  ;;  %v389_v44 = vmul.f32 0.03125, %v382_v42  ;;  %v390_v45 = vmul.f32 0.03125, %v385_v43 }
 0x21a   : > { %v392_v46 = vadd.f32 1e-05, %v389_v44  ;;  %v393_v47 = vadd.f32 1e-05, %v390_v45 }
 0x21c   : > { %531 = vrsqrt.f32 %v392_v46 }
 0x21d   : > { %533 = vrsqrt.f32 %v393_v47 }
 0x222   : > { %v530_v48 = vpop.eup %529 }
 0x223   : > { %v400_v50 = vmul.f32 %v530_v48, %v376_v28 }
 0x225   : > { %v409_v52 = vmul.f32 %v493_v49, %v400_v50 }
 0x226   : > { %v532_v53 = vpop.eup %531 }
 0x227   : > { %v534_v54 = vpop.eup %533  ;;  %v418_v55 = vadd.f32 %v494_v51, %v409_v52  ;;  %v398_v56 = vmul.f32 %v532_v53, %v374_v33 }
 0x228   : > { %v399_v57 = vmul.f32 %v534_v54, %v375_v29 }
 0x229   : > { %v419_v58 = vsel %vm343_vm2, %v418_v55, 0.0  ;;  %v407_v59 = vmul.f32 %v493_v49, %v398_v56 }
 0x22a   : > { %422 = vst.msk [vmem:[%s253_s29 + $0x10] sm:$0xff] %vm359_vm4, %v419_v58  ;;  %v408_v60 = vmul.f32 %v493_v49, %v399_v57 }
 0x22b   : > { %v416_v61 = vadd.f32 %v494_v51, %v407_v59 }
 0x22c   : > { %v417_v62 = vadd.f32 %v494_v51, %v408_v60 }
 0x22d   : > { %420 = vst.msk [vmem:[%s253_s29] sm:$0xff] %vm359_vm4, %v416_v61 }
 0x22e   : > { %421 = vst.msk [vmem:[%s253_s29 + $0x8] sm:$0xff] %vm359_vm4, %v417_v62 }
 0x22f PF: > { %s16_s21 = sadd.s32 1, %s541_s21  }
 0x230   : > { %p13_p5 = scmp.ge.s32.totalorder %s16_s21, 4  }
 0x232   :  { %15 = sbr.rel (!%p13_p5) target bundleno = 1 (0x1), region = 74 }

</bundles_post_ra>
